<compile_context>
chip_gen: v7x
topology: tpu7x:2x2x1
jax: 0.10.0
libtpu: 0.0.40
codegen_flags: <defaults>
</compile_context>

<pallas_src>
import jax
import jax.numpy as jnp
from jax.experimental import pallas as pl
from jax.experimental.pallas import tpu as pltpu


def _energy_softmax_kernel(x0_ref, x1_ref, wq_ref, bq_ref, wk_ref, bk_ref,
                           attn_ref):
    """Pass 1: accumulate energy over spatial tiles; softmax on the last tile."""
    B0 = x0_ref.shape[0]
    B1 = x1_ref.shape[0]
    C4 = wq_ref.shape[0]
    tS = x0_ref.shape[-1]

    @pl.when(pl.program_id(0) == 0)
    def _():
        attn_ref[...] = jnp.zeros_like(attn_ref)

    wq = wq_ref[...]          # (C4, C)
    bq = bq_ref[...]          # (C4, 1)
    wk = wk_ref[...]          # (C4, C)
    bk = bk_ref[...]          # (C4, 1)

    # 1x1 conv == one lane-dense channel matmul per (tiny) batch entry; flatten
    # each projection to a single long row (no-op when C4 == 1).
    q_rows = [(jnp.dot(wq, x0_ref[b], preferred_element_type=jnp.float32)
               + bq).reshape(1, C4 * tS) for b in range(B0)]
    k_rows = [(jnp.dot(wk, x1_ref[b], preferred_element_type=jnp.float32)
               + bk).reshape(1, C4 * tS) for b in range(B1)]
    q2 = q_rows[0] if B0 == 1 else jnp.concatenate(q_rows, axis=0)   # (B0, C4*tS)
    k2 = k_rows[0] if B1 == 1 else jnp.concatenate(k_rows, axis=0)   # (B1, C4*tS)

    # Energy contribution of this spatial tile: one long-K MXU contraction.
    attn_ref[...] += jax.lax.dot_general(
        k2, q2, dimension_numbers=(((1,), (1,)), ((), ())),
        preferred_element_type=jnp.float32)

    @pl.when(pl.program_id(0) == pl.num_programs(0) - 1)
    def _():
        e = attn_ref[...]
        m = jnp.max(e, axis=-1, keepdims=True)
        p = jnp.exp(e - m)
        denom = jnp.sum(p, axis=-1, keepdims=True)
        # Exact reciprocal keeps the 1e-4 tolerance (approx=True -> free EUP slot
        # if a looser tolerance is acceptable).
        attn_ref[...] = p * pl.reciprocal(denom, approx=False)


def _apply_attention_kernel(x0_ref, x1_ref, wv_ref, bv_ref, attn_ref, gamma_ref,
                            out_ref):
    """Pass 2: out = gamma * (attention @ V) + x1, tiled over S."""
    B0 = x0_ref.shape[0]
    B1 = x1_ref.shape[0]

    wv = wv_ref[...]          # (C, C)
    bv = bv_ref[...]          # (C, 1)
    gamma = gamma_ref[0, 0]   # scalar from SMEM

    # Value projection: one lane-dense MXU matmul per (tiny) source batch entry.
    v = [jnp.dot(wv, x0_ref[b], preferred_element_type=jnp.float32) + bv
         for b in range(B0)]                                         # each (C, tS)

    # attention @ V as scalar-broadcast FMAs (attention scalars come from SMEM),
    # gamma*out + x1 epilogue in f32, one full (C, tS) slab store per row.
    for b1 in range(B1):
        acc = attn_ref[b1, 0] * v[0]
        for b0 in range(1, B0):
            acc = acc + attn_ref[b1, b0] * v[b0]
        out_ref[b1] = (gamma * acc
                       + x1_ref[b1].astype(jnp.float32)).astype(out_ref.dtype)


def _pick_spatial_tile(S, lane_bytes, budget_bytes=4 * 1024 * 1024):
    """Largest 128-multiple tile dividing S whose tiled footprint fits budget."""
    for t in (1024, 512, 256, 128):
        if S % t == 0 and t * lane_bytes <= budget_bytes:
            return t
    return S   # fallback: single full-width block (also handles S % 128 != 0)


def self_attn_forward(x0, x1, params):
    wq, bq, wk, bk, wv, bv, gamma = (params[k] for k in
                                     ("wq", "bq", "wk", "bk", "wv", "bv", "gamma"))
    B0, C, H0, W0 = x0.shape
    B1, C1, H1, W1 = x1.shape
    S = H0 * W0
    assert C == C1 and S == H1 * W1, "flattened feature sizes must match"
    C4 = wq.shape[0]

    # Lane-dense NCS views (pure metadata reshape; no dtype-cast HBM copies).
    x0r = x0.reshape(B0, C, S)
    x1r = x1.reshape(B1, C, S)
    bq2 = bq.reshape(C4, 1)
    bk2 = bk.reshape(C4, 1)
    bv2 = bv.reshape(C, 1)
    g2 = gamma.reshape(1, 1)

    itemsize = jnp.dtype(x0.dtype).itemsize
    # Spatially-tiled operands (x0, x1, out), double-buffered.
    lane_bytes = 2 * (B0 + 2 * B1) * C * itemsize
    tS = _pick_spatial_tile(S, lane_bytes)
    grid = (S // tS,)

    # ---- Pass 1: energy accumulation across spatial tiles + softmax ----------
    attn = pl.pallas_call(
        _energy_softmax_kernel,
        out_shape=jax.ShapeDtypeStruct((B1, B0), jnp.float32),
        grid=grid,
        in_specs=[
            pl.BlockSpec((B0, C, tS), lambda i: (0, 0, i)),      # x0 tile
            pl.BlockSpec((B1, C, tS), lambda i: (0, 0, i)),      # x1 tile
            pl.BlockSpec((C4, C), lambda i: (0, 0)),             # wq
            pl.BlockSpec((C4, 1), lambda i: (0, 0)),             # bq
            pl.BlockSpec((C4, C), lambda i: (0, 0)),             # wk
            pl.BlockSpec((C4, 1), lambda i: (0, 0)),             # bk
        ],
        out_specs=pl.BlockSpec((B1, B0), lambda i: (0, 0)),      # resident accum
        compiler_params=pltpu.CompilerParams(
            dimension_semantics=("arbitrary",),
            vmem_limit_bytes=32 * 1024 * 1024),
    )(x0r, x1r, wq, bq2, wk, bk2)

    # ---- Pass 2: out = gamma * (attention @ V) + x1, tiled over S -------------
    out_r = pl.pallas_call(
        _apply_attention_kernel,
        out_shape=jax.ShapeDtypeStruct((B1, C, S), x1.dtype),
        grid=grid,
        in_specs=[
            pl.BlockSpec((B0, C, tS), lambda i: (0, 0, i)),      # x0 tile
            pl.BlockSpec((B1, C, tS), lambda i: (0, 0, i)),      # x1 tile
            pl.BlockSpec((C, C), lambda i: (0, 0)),              # wv
            pl.BlockSpec((C, 1), lambda i: (0, 0)),              # bv
            pl.BlockSpec(memory_space=pltpu.MemorySpace.SMEM),   # attention scalars
            pl.BlockSpec(memory_space=pltpu.MemorySpace.SMEM),   # gamma scalar
        ],
        out_specs=pl.BlockSpec((B1, C, tS), lambda i: (0, 0, i)),
        compiler_params=pltpu.CompilerParams(
            dimension_semantics=("parallel",),
            vmem_limit_bytes=32 * 1024 * 1024),
    )(x0r, x1r, wv, bv2, attn, g2)

    out = out_r.reshape(B1, C1, H1, W1)
    return out, attn


def reference_forward(x0, x1, params):
    """Pure-JAX reference mirroring the PyTorch forward exactly."""
    wq, bq, wk, bk, wv, bv, gamma = (params[k] for k in
                                     ("wq", "bq", "wk", "bk", "wv", "bv", "gamma"))
    B0, C, H0, W0 = x0.shape
    B1, C1, H1, W1 = x1.shape

    def conv1x1(x, w, b):
        return jnp.einsum('oc,bchw->bohw', w, x) + b[None, :, None, None]

    pq = conv1x1(x0, wq, bq).reshape(B0, -1)        # (B0, M)
    pk = conv1x1(x1, wk, bk).reshape(B1, -1)        # (B1, M)
    energy = pk @ pq.T                              # (B1, B0)
    att = jax.nn.softmax(energy, axis=-1)
    pv = conv1x1(x0, wv, bv).reshape(B0, -1)        # (B0, N)
    out = (att @ pv).reshape(B1, C1, H1, W1)
    out = gamma.reshape(()) * out + x1
    return out, att


if __name__ == "__main__":
    key = jax.random.PRNGKey(0)
    B, C, H, W = 2, 4, 32, 64       # S = 2048 -> two 1024-lane spatial tiles
    C4 = C // 4
    k0, k1, k2, k3, k4 = jax.random.split(key, 5)

    x0 = jax.random.normal(k0, (B, C, H, W), dtype=jnp.float32)
    x1 = jax.random.normal(k1, (B, C, H, W), dtype=jnp.float32)

    # Deterministic parameters (Conv2d kernel_size=1 -> weights stored as (out, in)).
    params = {
        "wq": 0.1 * jax.random.normal(k2, (C4, C), dtype=jnp.float32),
        "bq": jnp.linspace(-0.1, 0.1, C4).astype(jnp.float32),
        "wk": 0.1 * jax.random.normal(k3, (C4, C), dtype=jnp.float32),
        "bk": jnp.linspace(-0.05, 0.05, C4).astype(jnp.float32),
        "wv": 0.1 * jax.random.normal(k4, (C, C), dtype=jnp.float32),
        "bv": jnp.linspace(-0.2, 0.2, C).astype(jnp.float32),
        # Module init is zeros; use a nonzero gamma so the attention@V + residual
        # path is actually exercised by the check.
        "gamma": jnp.full((1,), 0.5, dtype=jnp.float32),
    }

    out, attn = self_attn_forward(x0, x1, params)
    jax.block_until_ready((out, attn))

    out_ref, attn_ref = reference_forward(x0, x1, params)
    assert out.shape == (B, C, H, W) and attn.shape == (B, B)
    assert jnp.allclose(attn, attn_ref, atol=1e-4, rtol=1e-4)
    assert jnp.allclose(out, out_ref, atol=1e-4, rtol=1e-4)
    print("KERNEL_OK")
</pallas_src>

<mosaic_0001>
module attributes {stable_mosaic.version = 11 : i64} {
  func.func @_energy_softmax_kernel(%arg0: i32, %arg1: memref<2x4x1024xf32, #tpu.memory_space<vmem>>, %arg2: memref<2x4x1024xf32, #tpu.memory_space<vmem>>, %arg3: memref<1x4xf32, #tpu.memory_space<vmem>>, %arg4: memref<1x1xf32, #tpu.memory_space<vmem>>, %arg5: memref<1x4xf32, #tpu.memory_space<vmem>>, %arg6: memref<1x1xf32, #tpu.memory_space<vmem>>, %arg7: memref<2x2xf32, #tpu.memory_space<vmem>>) attributes {dimension_semantics = [#tpu.dimension_semantics<arbitrary>], iteration_bounds = array<i64: 2>, scalar_prefetch = 0 : i64, scratch_operands = 0 : i64, tpu.core_type = #tpu.core_type<tc>, window_params = [{transform_indices = @transform_0, window_bounds = array<i64: 2, 4, 1024>}, {transform_indices = @transform_1, window_bounds = array<i64: 2, 4, 1024>}, {pipeline_mode = #tpu.pipeline_mode<synchronous>, transform_indices = @transform_2, window_bounds = array<i64: 1, 4>}, {pipeline_mode = #tpu.pipeline_mode<synchronous>, transform_indices = @transform_3, window_bounds = array<i64: 1, 1>}, {pipeline_mode = #tpu.pipeline_mode<synchronous>, transform_indices = @transform_4, window_bounds = array<i64: 1, 4>}, {pipeline_mode = #tpu.pipeline_mode<synchronous>, transform_indices = @transform_5, window_bounds = array<i64: 1, 1>}, {pipeline_mode = #tpu.pipeline_mode<synchronous>, transform_indices = @transform_6, window_bounds = array<i64: 2, 2>}]} {
    %c0_i32 = arith.constant 0 : i32
    %0 = arith.cmpi eq, %arg0, %c0_i32 : i32
    %1 = arith.extui %0 : i1 to i32
    %c0_i32_0 = arith.constant 0 : i32
    %2 = arith.cmpi ne, %1, %c0_i32_0 : i32
    scf.if %2 {
      %cst_28 = arith.constant 0.000000e+00 : f32
      %36 = vector.broadcast %cst_28 : f32 to vector<2x2xf32>
      %c0_29 = arith.constant 0 : index
      %c0_30 = arith.constant 0 : index
      %37 = vector.load %arg7[%c0_29, %c0_30] : memref<2x2xf32, #tpu.memory_space<vmem>>, vector<2x2xf32>
      tpu.vector_store %arg7[%c0_29, %c0_30], %36 {strides = array<i32>} : memref<2x2xf32, #tpu.memory_space<vmem>>, vector<2x2xf32>,
    } else {
    }
    %c0 = arith.constant 0 : index
    %c0_1 = arith.constant 0 : index
    %3 = vector.load %arg3[%c0, %c0_1] : memref<1x4xf32, #tpu.memory_space<vmem>>, vector<1x4xf32>
    %c0_2 = arith.constant 0 : index
    %c0_3 = arith.constant 0 : index
    %4 = vector.load %arg4[%c0_2, %c0_3] : memref<1x1xf32, #tpu.memory_space<vmem>>, vector<1x1xf32>
    %c0_4 = arith.constant 0 : index
    %c0_5 = arith.constant 0 : index
    %5 = vector.load %arg5[%c0_4, %c0_5] : memref<1x4xf32, #tpu.memory_space<vmem>>, vector<1x4xf32>
    %c0_6 = arith.constant 0 : index
    %c0_7 = arith.constant 0 : index
    %6 = vector.load %arg6[%c0_6, %c0_7] : memref<1x1xf32, #tpu.memory_space<vmem>>, vector<1x1xf32>
    %c0_8 = arith.constant 0 : index
    %c0_9 = arith.constant 0 : index
    %c0_10 = arith.constant 0 : index
    %7 = vector.load %arg1[%c0_8, %c0_9, %c0_10] : memref<2x4x1024xf32, #tpu.memory_space<vmem>>, vector<1x4x1024xf32>
    %8 = vector.shape_cast %7 : vector<1x4x1024xf32> to vector<4x1024xf32>
    %cst = arith.constant dense<0.000000e+00> : vector<1x1024xf32>
    %9 = tpu.matmul %3, %8, %cst {dimension_numbers = #tpu.dot_dimension_numbers<[1], [0], [0], [1], [0, 0, 1, 1], [], []>} : vector<1x4xf32>, vector<4x1024xf32>, vector<1x1024xf32> -> vector<1x1024xf32>
    %10 = vector.broadcast %4 : vector<1x1xf32> to vector<1x1024xf32>
    %11 = arith.addf %9, %10 : vector<1x1024xf32>
    %c1 = arith.constant 1 : index
    %c0_11 = arith.constant 0 : index
    %c0_12 = arith.constant 0 : index
    %12 = vector.load %arg1[%c1, %c0_11, %c0_12] : memref<2x4x1024xf32, #tpu.memory_space<vmem>>, vector<1x4x1024xf32>
    %13 = vector.shape_cast %12 : vector<1x4x1024xf32> to vector<4x1024xf32>
    %cst_13 = arith.constant dense<0.000000e+00> : vector<1x1024xf32>
    %14 = tpu.matmul %3, %13, %cst_13 {dimension_numbers = #tpu.dot_dimension_numbers<[1], [0], [0], [1], [0, 0, 1, 1], [], []>} : vector<1x4xf32>, vector<4x1024xf32>, vector<1x1024xf32> -> vector<1x1024xf32>
    %15 = vector.broadcast %4 : vector<1x1xf32> to vector<1x1024xf32>
    %16 = arith.addf %14, %15 : vector<1x1024xf32>
    %c0_14 = arith.constant 0 : index
    %c0_15 = arith.constant 0 : index
    %c0_16 = arith.constant 0 : index
    %17 = vector.load %arg2[%c0_14, %c0_15, %c0_16] : memref<2x4x1024xf32, #tpu.memory_space<vmem>>, vector<1x4x1024xf32>
    %18 = vector.shape_cast %17 : vector<1x4x1024xf32> to vector<4x1024xf32>
    %cst_17 = arith.constant dense<0.000000e+00> : vector<1x1024xf32>
    %19 = tpu.matmul %5, %18, %cst_17 {dimension_numbers = #tpu.dot_dimension_numbers<[1], [0], [0], [1], [0, 0, 1, 1], [], []>} : vector<1x4xf32>, vector<4x1024xf32>, vector<1x1024xf32> -> vector<1x1024xf32>
    %20 = vector.broadcast %6 : vector<1x1xf32> to vector<1x1024xf32>
    %21 = arith.addf %19, %20 : vector<1x1024xf32>
    %c1_18 = arith.constant 1 : index
    %c0_19 = arith.constant 0 : index
    %c0_20 = arith.constant 0 : index
    %22 = vector.load %arg2[%c1_18, %c0_19, %c0_20] : memref<2x4x1024xf32, #tpu.memory_space<vmem>>, vector<1x4x1024xf32>
    %23 = vector.shape_cast %22 : vector<1x4x1024xf32> to vector<4x1024xf32>
    %cst_21 = arith.constant dense<0.000000e+00> : vector<1x1024xf32>
    %24 = tpu.matmul %5, %23, %cst_21 {dimension_numbers = #tpu.dot_dimension_numbers<[1], [0], [0], [1], [0, 0, 1, 1], [], []>} : vector<1x4xf32>, vector<4x1024xf32>, vector<1x1024xf32> -> vector<1x1024xf32>
    %25 = vector.broadcast %6 : vector<1x1xf32> to vector<1x1024xf32>
    %26 = arith.addf %24, %25 : vector<1x1024xf32>
    %27 = tpu.concatenate %11, %16 in 0 : vector<1x1024xf32>, vector<1x1024xf32> -> vector<2x1024xf32>
    %28 = tpu.concatenate %21, %26 in 0 : vector<1x1024xf32>, vector<1x1024xf32> -> vector<2x1024xf32>
    %c0_22 = arith.constant 0 : index
    %c0_23 = arith.constant 0 : index
    %29 = vector.load %arg7[%c0_22, %c0_23] : memref<2x2xf32, #tpu.memory_space<vmem>>, vector<2x2xf32>
    %cst_24 = arith.constant dense<0.000000e+00> : vector<2x2xf32>
    %30 = tpu.matmul %28, %27, %cst_24 {dimension_numbers = #tpu.dot_dimension_numbers<[1], [1], [0], [0], [0, 0, 1, 0], [], []>} : vector<2x1024xf32>, vector<2x1024xf32>, vector<2x2xf32> -> vector<2x2xf32>
    %31 = arith.addf %29, %30 : vector<2x2xf32>
    %c0_25 = arith.constant 0 : index
    %c0_26 = arith.constant 0 : index
    %32 = vector.load %arg7[%c0_25, %c0_26] : memref<2x2xf32, #tpu.memory_space<vmem>>, vector<2x2xf32>
    tpu.vector_store %arg7[%c0_25, %c0_26], %31 {strides = array<i32>} : memref<2x2xf32, #tpu.memory_space<vmem>>, vector<2x2xf32>,
    %c1_i32 = arith.constant 1 : i32
    %33 = arith.cmpi eq, %arg0, %c1_i32 : i32
    %34 = arith.extui %33 : i1 to i32
    %c0_i32_27 = arith.constant 0 : i32
    %35 = arith.cmpi ne, %34, %c0_i32_27 : i32
    scf.if %35 {
      %c0_28 = arith.constant 0 : index
      %c0_29 = arith.constant 0 : index
      %36 = vector.load %arg7[%c0_28, %c0_29] : memref<2x2xf32, #tpu.memory_space<vmem>>, vector<2x2xf32>
      %cst_30 = arith.constant dense<0xFF800000> : vector<2xf32>
      %37 = vector.multi_reduction <maximumf>, %36, %cst_30 [1] : vector<2x2xf32> to vector<2xf32>
      %38 = vector.shape_cast %37 : vector<2xf32> to vector<2x1xf32>
      %39 = vector.broadcast %38 : vector<2x1xf32> to vector<2x2xf32>
      %40 = arith.subf %36, %39 : vector<2x2xf32>
      %41 = math.exp %40 : vector<2x2xf32>
      %cst_31 = arith.constant dense<0.000000e+00> : vector<2xf32>
      %42 = vector.multi_reduction <add>, %41, %cst_31 [1] : vector<2x2xf32> to vector<2xf32>
      %43 = vector.shape_cast %42 : vector<2xf32> to vector<2x1xf32>
      %44 = tpu.reciprocal %43 : vector<2x1xf32> -> vector<2x1xf32>
      %45 = vector.broadcast %44 : vector<2x1xf32> to vector<2x2xf32>
      %46 = arith.mulf %41, %45 : vector<2x2xf32>
      %c0_32 = arith.constant 0 : index
      %c0_33 = arith.constant 0 : index
      %47 = vector.load %arg7[%c0_32, %c0_33] : memref<2x2xf32, #tpu.memory_space<vmem>>, vector<2x2xf32>
      tpu.vector_store %arg7[%c0_32, %c0_33], %46 {strides = array<i32>} : memref<2x2xf32, #tpu.memory_space<vmem>>, vector<2x2xf32>,
    } else {
    }
    return
  }
  func.func @transform_0(%arg0: i32) -> (i32, i32, i32) {
    %c0_i32 = arith.constant 0 : i32
    %c0_i32_0 = arith.constant 0 : i32
    %c0_i32_1 = arith.constant 0 : i32
    return %c0_i32, %c0_i32_0, %arg0 : i32, i32, i32
  }
  func.func @transform_1(%arg0: i32) -> (i32, i32, i32) {
    %c0_i32 = arith.constant 0 : i32
    %c0_i32_0 = arith.constant 0 : i32
    %c0_i32_1 = arith.constant 0 : i32
    return %c0_i32, %c0_i32_0, %arg0 : i32, i32, i32
  }
  func.func @transform_2(%arg0: i32) -> (i32, i32) {
    %c0_i32 = arith.constant 0 : i32
    %c0_i32_0 = arith.constant 0 : i32
    %c0_i32_1 = arith.constant 0 : i32
    return %c0_i32, %c0_i32_0 : i32, i32
  }
  func.func @transform_3(%arg0: i32) -> (i32, i32) {
    %c0_i32 = arith.constant 0 : i32
    %c0_i32_0 = arith.constant 0 : i32
    %c0_i32_1 = arith.constant 0 : i32
    return %c0_i32, %c0_i32_0 : i32, i32
  }
  func.func @transform_4(%arg0: i32) -> (i32, i32) {
    %c0_i32 = arith.constant 0 : i32
    %c0_i32_0 = arith.constant 0 : i32
    %c0_i32_1 = arith.constant 0 : i32
    return %c0_i32, %c0_i32_0 : i32, i32
  }
  func.func @transform_5(%arg0: i32) -> (i32, i32) {
    %c0_i32 = arith.constant 0 : i32
    %c0_i32_0 = arith.constant 0 : i32
    %c0_i32_1 = arith.constant 0 : i32
    return %c0_i32, %c0_i32_0 : i32, i32
  }
  func.func @transform_6(%arg0: i32) -> (i32, i32) {
    %c0_i32 = arith.constant 0 : i32
    %c0_i32_0 = arith.constant 0 : i32
    %c0_i32_1 = arith.constant 0 : i32
    return %c0_i32, %c0_i32_0 : i32, i32
  }
}

</mosaic_0001>

<bundles_post_ra>
// kernel: tpu_custom_call.1
= control target key start
LH: loop header
LB: loop body
LE: loop exit
PB: predicated region body
PF: predicated region fallthrough
CT: control target
= control target key end

     0   :  { %s2673_s0 = inlined_call_operand.hbm [shape: f32[2,4,2048], index: 0, kind: input, shape index: {}]   ;;  %s2674_s1 = inlined_call_operand.hbm [shape: f32[2,4,2048], index: 1, kind: input, shape index: {}]   ;;  %s2675_s2 = inlined_call_operand.vmem [shape: f32[1,4], index: 2, kind: input, shape index: {}]   ;;  %s2676_s3 = inlined_call_operand.<no memory space> [shape: f32[1,1], index: 3, kind: input, shape index: {}]   ;;  %s2677_s4 = inlined_call_operand.vmem [shape: f32[1,4], index: 4, kind: input, shape index: {}]   ;;  %s2678_s6 = inlined_call_operand.hbm [shape: f32[2,2], index: 6, kind: output, shape index: {}]   ;;  %s2679_s5 = inlined_call_operand.<no memory space> [shape: f32[1,1], index: 5, kind: input, shape index: {}]  }
   0x1   :  { %v11_v0 = vstv %s2676_s3  ;;  %v13_v1 = vstv %s2679_s5 }
   0x2   :  { %12 = vst [vmem:[#allocation2] sm:$0x1] %v11_v0  ;;  %14 = vst [vmem:[#allocation3] sm:$0x1] %v13_v1 }
   0x3   :  { %15 = vsyncpa [#allocation5], 0 }
   0x4   :  { %17 = vsyncpa [#allocation5 + $0x1], 0 }
   0x5   :  { %18 = vsyncpa [#allocation8], 0 }
   0x6   :  { %20 = vsyncpa [#allocation8 + $0x1], 0 }
   0x7   :  { %21 = vsyncpa [#allocation6], 0  ;;  %s2370_s25 = smov 0   ;;  %s2372_s26 = smov 0  }
   0x8   :  { %s2374_s27 = smov 0   ;;  %s2376_s28 = smov 0  }
   0x9 LB: > { %s2389_s3 = sadd.s32 4294967295, %s2318_s28   ;;  %s2392_s5 = sadd.s32 1, %s2318_s28   ;;  %s2318_s28 = sphi %s2376_s28, %s2688_s28   ;;  %s2314_s27 = sphi %s2374_s27, %s2687_s27   ;;  %s2310_s26 = sphi %s2372_s26, %s2686_s26   ;;  %s2306_s25 = sphi %s2370_s25, %s2685_s25  }
   0xa   : > { %s31_s29 = ssub.s32 %s2318_s28, %s2392_s5  ;;  %s34_s30 = sadd.s32 1, %s2314_s27 }
   0xb   : > { %p32_p0 = scmp.eq.s32.totalorder %s31_s29, 0  ;;  %p41_p1 = scmp.ne.s32.totalorder %s2314_s27, %s2310_s26 }
   0xc   : > { %p42_p2 = scmp.eq.s32.totalorder %s2318_s28, 0  ;;  %p47_p3 = scmp.ne.s32.totalorder %s2310_s26, %s2306_s25 }
   0xd   : > { %s2402_s7 = scalar_select %p32_p0, %s2314_s27, %s34_s30  }
   0xe   : > { %p43_p4 = por %p42_p2, %p41_p1  ;;  %p48_p5 = scmp.eq.s32.totalorder %s2389_s3, 0 }
   0xf   : > { %p2127_p6 = scmp.lt.s32.totalorder %s2318_s28, 2  ;;  %s2411_s9 = sand.u32 1, %s2314_s27  }
  0x10   : > { %p2406_p7 = por %p48_p5, %p47_p3  ;;  %s2039_s10 = sshll.u32 %s2411_s9, 6 }
  0x11   : > { %s2110_s11 = sshll.u32 %s2318_s28, 9  ;;  %s218_s15 = scalar_lea.vmem [#allocation4], %s2039_s10 }
  0x12   : > { %s2681_s8 = scalar_select %p2406_p7, 1, 0 }
  0x13   : > { %s2420_s14 = scalar_lea.hbm %s2673_s0, %s2110_s11  ;;  %s225_s16 = sshll.u32 %s218_s15, 4  ;;  %s2424_s16 = int_to_ptr.vmem [resolvable:$true] %s225_s16 }
  0x14   : > { %p2426_p8 = pnand %p2127_p6, %p43_p4  ;;  %s215_s18 = scalar_lea.sflag [#allocation5], %s2411_s9 }
  0x15   : > { %s2190_s19 = scalar_lea.hbm %s2420_s14, 1024  ;;  %s2195_s22 = scalar_lea.hbm %s2673_s0, 2048 }
  0x16   : > { %p2191_p9 = scmp.ne.s32.totalorder %s2420_s14, %s2190_s19  ;;  %p2192_p10 = pneg %p2426_p8 }
  0x17   : > { %p2196_p13 = scmp.lt.u32.totalorder %s2420_s14, %s2673_s0  ;;  %p2197_p0 = scmp.lt.u32.totalorder %s2195_s22, %s2190_s19 }
  0x18   : > { %p2193_p11 = pnand %p2192_p10, %p2191_p9  ;;  %p2199_p2 = scmp.lt.u32.totalorder %s2190_s19, %s2420_s14 }
  0x19   : > { %p2198_p1 = por %p2197_p0, %p2196_p13 }
  0x1a   : > { %p2194_p12 = pneg %p2193_p11 }
  0x1b   : > { %p2200_p3 = por %p2199_p2, %p2198_p1 }
  0x1d   : > { %p2201_p4 = pnand %p2200_p3, %p2194_p12 }
  0x1f   : > { %2204 = shalt.err (!%p2201_p4)
}
  0x20   : > { %s2205_s25 = scalar_lea.vmem %s2424_s16, 1024  ;;  %s2320_s29 = smov [#allocation4]  }
  0x21   : > { %p2206_p5 = scmp.ne.s32.totalorder %s2424_s16, %s2205_s25  ;;  %s2210_s30 = sshll.u32 %s2320_s29, 4  ;;  %s2211_s30 = int_to_ptr.vmem [resolvable:$false] %s2210_s30 }
  0x22   : > { %s2212_s12 = scalar_lea.vmem %s2211_s30, 2048  ;;  %p2213_p11 = scmp.lt.s32.totalorder %s2424_s16, %s2211_s30 }
  0x23   : > { %p2208_p6 = pnand %p2206_p5, %p2192_p10  ;;  %p2214_p13 = scmp.lt.s32.totalorder %s2212_s12, %s2205_s25 }
  0x25   : > { %p2209_p9 = pneg %p2208_p6  ;;  %p2215_p0 = por %p2214_p13, %p2213_p11 }
  0x27   : > { %p2216_p1 = pnand %p2215_p0, %p2209_p9 }
  0x29   : > { %2219 = shalt.err (!%p2216_p1)
}
  0x2a   : > { %s2321_s13 = smov 1024   ;;  %s2322_s15 = smov 512  }
  0x2b   : > { %s2323_s19 = smov 32   ;;  %p2045_p12 = scmp.ge.s32.totalorder %s2318_s28, 1 }
  0x2c   : > { %2123 = dma.hbm_to_vmem [thread:$0]  (!%p2426_p8), %s2420_s14, 1024, %s2424_s16, %s215_s18, %s2321_s13, %s2322_s15, %s2323_s19  }
  0x2d   : > { %p254_p2 = scmp.lt.s32.totalorder %s2318_s28, 3  ;;  %s2472_s23 = scalar_lea.hbm %s2674_s1, %s2110_s11 }
  0x2e   : > { %s239_s24 = scalar_lea.vmem [#allocation7], %s2039_s10  ;;  %s236_s14 = scalar_lea.sflag [#allocation8], %s2411_s9 }
  0x2f   : > { %p2463_p3 = pnand %p2045_p12, %p254_p2  ;;  %s246_s25 = sshll.u32 %s239_s24, 4  ;;  %s2476_s25 = int_to_ptr.vmem [resolvable:$true] %s246_s25 }
  0x30   : > { %s2220_s16 = scalar_lea.hbm %s2472_s23, 1024  ;;  %s2225_s11 = scalar_lea.hbm %s2674_s1, 2048 }
  0x31   : > { %p2221_p4 = scmp.ne.s32.totalorder %s2472_s23, %s2220_s16  ;;  %p2226_p9 = scmp.lt.u32.totalorder %s2472_s23, %s2674_s1 }
  0x32   : > { %p2227_p11 = scmp.lt.u32.totalorder %s2225_s11, %s2220_s16  ;;  %p2229_p0 = scmp.lt.u32.totalorder %s2220_s16, %s2472_s23 }
  0x33   : > { %p2223_p5 = pnand %p2221_p4, %p2192_p10 }
  0x34   : > { %p2228_p13 = por %p2227_p11, %p2226_p9 }
  0x35   : > { %p2224_p6 = pneg %p2223_p5 }
  0x36   : > { %p2230_p1 = por %p2229_p0, %p2228_p13 }
  0x38   : > { %p2231_p12 = pnand %p2230_p1, %p2224_p6 }
  0x3a   : > { %2234 = shalt.err (!%p2231_p12)
}
  0x3b   : > { %s2235_s10 = scalar_lea.vmem %s2476_s25, 1024  ;;  %s2324_s12 = smov [#allocation7]  }
  0x3c   : > { %p2236_p2 = scmp.ne.s32.totalorder %s2476_s25, %s2235_s10  ;;  %s2240_s21 = sshll.u32 %s2324_s12, 4  ;;  %s2241_s21 = int_to_ptr.vmem [resolvable:$false] %s2240_s21 }
  0x3d   : > { %s2242_s22 = scalar_lea.vmem %s2241_s21, 2048  ;;  %p2243_p7 = scmp.lt.s32.totalorder %s2476_s25, %s2241_s21 }
  0x3e   : > { %p2238_p4 = pnand %p2236_p2, %p2192_p10  ;;  %p2244_p9 = scmp.lt.s32.totalorder %s2242_s22, %s2235_s10 }
  0x40   : > { %p2239_p5 = pneg %p2238_p4  ;;  %p2245_p11 = por %p2244_p9, %p2243_p7 }
  0x42   : > { %p2246_p13 = pnand %p2245_p11, %p2239_p5 }
  0x44   : > { %2249 = shalt.err (!%p2246_p13)
}
  0x45   : > { %2126 = dma.hbm_to_vmem [thread:$0]  (!%p2426_p8), %s2472_s23, 1024, %s2476_s25, %s236_s14, %s2321_s13, %s2322_s15, %s2323_s19  }
  0x46   : > { %258 = sbr.rel (%p2463_p3) target bundleno = 907 (0x38b), region = 44  ;;  %s260_s24 = sand.u32 (!%p2463_p3), 1, %s2310_s26  }
  0x47   : > { %s2046_s16 = sshll.u32 (!%p2463_p3), %s260_s24, 6  ;;  %s261_s28 = scalar_lea.sflag (!%p2463_p3), [#allocation5], %s260_s24 }
  0x48   : > { %s2510_s18 = scalar_lea.vmem (!%p2463_p3), [#allocation4], %s2046_s16  ;;  %p2684_p7 = scmp.ne.s32.totalorder (!%p2463_p3), %s2681_s8, 0 }
  0x4d   : > { %2293 = dma.done.wait (%p2684_p7), %s261_s28, 1024  }
  0x4e   : > { %2295 = vsyncadd (%p2684_p7), %s261_s28, 4294966272  ;;  %s270_s9 = scalar_lea.sflag [#allocation8], %s260_s24  ;;  %s2516_s17 = scalar_lea.vmem [#allocation7], %s2046_s16 }
  0x4f   : > { %2297 = dma.done.wait (%p2684_p7), %s270_s9, 1024  }
  0x50   : > { %2299 = vsyncadd (%p2684_p7), %s270_s9, 4294966272  ;;  %p2048_p8 = scmp.ne.s32.totalorder %s2389_s3, 0 }
  0x51   : > { %vm308_vm0 = vcmask (!%p2048_p8), 9216   ;;  %v2325_v2 = vmov (!%p2048_p8), 0.0  }
  0x52   : > { %307 = sbr.rel (%p2048_p8) target bundleno = 89 (0x59), region = 56  ;;  %309 = vst.msk [vmem:[#allocation9] sm:$0x3] (!%p2048_p8), %vm308_vm0, %v2325_v2 }
  0x59 PF: > { %v314_v3 = vld [vmem:[%s2510_s18] sm:$0xff]  ;;  %vm339_vm1 = vcmask 1043456   ;;  %v315_v4 = vld [vmem:[%s2510_s18 + $0x8] sm:$0xff]  ;;  %v2326_v7 = vmov 0.0   ;;  %v316_v8 = vld [vmem:[%s2510_s18 + $0x10] sm:$0xff]  ;;  %vm335_vm2 = vcmask 31744   ;;  %v323_v41 = vlaneseq }
  0x5a   : > { %v331_v5 = vcombine.high %v314_v3, %v314_v3  ;;  %v332_v6 = vcombine.high %v315_v4, %v315_v4  ;;  %420 = vmatprep.mubr.f32.mxu0 %v2326_v7  ;;  %491 = vmatprep.mubr.f32.mxu1 %v2326_v7  ;;  %v317_v9 = vld [vmem:[%s2510_s18 + $0x18] sm:$0xff]  ;;  %v333_v11 = vcombine.high %v316_v8, %v316_v8  ;;  %v2327_v13 = vmov 0   ;;  %v2061_v14 = vld [vmem:[%s2510_s18 + $0x20] sm:$0xff]  ;;  %v2062_v15 = vld [vmem:[%s2510_s18 + $0x28] sm:$0xff]  ;;  %p2105_p10 = scmp.ne.s32.totalorder %s2389_s3, 1 }
  0x5b   : > { %v310_v10 = vld [vmem:[%s2675_s2] sm:$0x1]  ;;  %v334_v12 = vcombine.high %v317_v9, %v317_v9  ;;  %2169 = vset.pattern.permute.xlu0 %v2327_v13  ;;  %v649_v16 = vcombine.high %v2061_v14, %v2061_v14  ;;  %v650_v17 = vcombine.high %v2062_v15, %v2062_v15  ;;  %v2063_v18 = vld [vmem:[%s2510_s18 + $0x30] sm:$0xff]  ;;  %v953_v22 = vld [vmem:[%s2516_s17] sm:$0xff]  ;;  %v2609_v42 = vshrl.u32 %v323_v41, 7 }
  0x5c   : > { %2049 = vmatprep.subr.msk.mxu0 %vm339_vm1, %v331_v5  ;;  %2052 = vmatprep.subr.msk.mxu1 %vm339_vm1, %v332_v6  ;;  %v2064_v19 = vld [vmem:[%s2510_s18 + $0x38] sm:$0xff]  ;;  %v651_v20 = vcombine.high %v2063_v18, %v2063_v18  ;;  %v954_v23 = vld [vmem:[%s2516_s17 + $0x8] sm:$0xff]  ;;  %v970_v24 = vcombine.high %v953_v22, %v953_v22  ;;  %v955_v26 = vld [vmem:[%s2516_s17 + $0x10] sm:$0xff]  ;;  %vm1614_vm3 = vcmask 1040384   ;;  %vm1937_vm4 = vcmask 9216  }
  0x5d   : > { %2050 = vmatpush1.msk.msra.mxu0 %vm339_vm1, %v314_v3  ;;  %2053 = vmatpush1.msk.msra.mxu1 %vm339_vm1, %v315_v4  ;;  %v652_v21 = vcombine.high %v2064_v19, %v2064_v19  ;;  %v971_v25 = vcombine.high %v954_v23, %v954_v23  ;;  %v956_v27 = vld [vmem:[%s2516_s17 + $0x18] sm:$0xff]  ;;  %v972_v29 = vcombine.high %v955_v26, %v955_v26  ;;  %v2089_v31 = vld [vmem:[%s2516_s17 + $0x20] sm:$0xff]  ;;  %v2090_v32 = vld [vmem:[%s2516_s17 + $0x28] sm:$0xff]  ;;  %v325_v47 = vsub.s32 0, %v2609_v42 }
  0x5e   : > { %2051 = vmatmul.mubr.msk.f32.vlgmr.msra.gmra.mrb[0].mxu0 %vm335_vm2, %v310_v10  ;;  %2054 = vmatmul.mubr.msk.f32.vlgmr.msra.gmra.mrb[0].mxu1 %vm335_vm2, %v310_v10  ;;  %v312_v28 = vld [vmem:[%s2677_s4] sm:$0x1]  ;;  %v973_v30 = vcombine.high %v956_v27, %v956_v27  ;;  %v1286_v33 = vcombine.high %v2089_v31, %v2089_v31  ;;  %v1287_v34 = vcombine.high %v2090_v32, %v2090_v32  ;;  %v2091_v35 = vld [vmem:[%s2516_s17 + $0x30] sm:$0xff]  ;;  %v313_v40 = vld [vmem:[#allocation3] sm:$0x1] }
  0x5f   : > { %2055 = vmatprep.subr.msk.mxu0 %vm339_vm1, %v333_v11  ;;  %2058 = vmatprep.subr.msk.mxu1 %vm339_vm1, %v334_v12  ;;  %v2092_v36 = vld [vmem:[%s2516_s17 + $0x38] sm:$0xff]  ;;  %v1288_v37 = vcombine.high %v2091_v35, %v2091_v35 }
  0x60   : > { %2056 = vmatpush1.msk.msra.mxu0 %vm339_vm1, %v316_v8  ;;  %562 = vmatprep.mubr.f32.mxu0 %v2326_v7  ;;  %v1289_v38 = vcombine.high %v2092_v36, %v2092_v36  ;;  %v311_v39 = vld [vmem:[#allocation2] sm:$0x1] }
  0x61   : > { %2059 = vmatpush1.msk.msra.mxu1 %vm339_vm1, %v317_v9  ;;  %633 = vmatprep.mubr.f32.mxu1 %v2326_v7 }
  0x62   : > { %2057 = vmatmul.mubr.msk.f32.vlgmr.msra.gmra.mrb[2].mxu0 %vm335_vm2, %v310_v10  ;;  %2060 = vmatmul.mubr.msk.f32.vlgmr.msra.gmra.mrb[2].mxu1 %vm335_vm2, %v310_v10 }
  0x63   : > { %2065 = vmatprep.subr.msk.mxu0 %vm339_vm1, %v649_v16  ;;  %2068 = vmatprep.subr.msk.mxu1 %vm339_vm1, %v650_v17 }
  0x64   : > { %2066 = vmatpush1.msk.msra.mxu0 %vm339_vm1, %v2061_v14  ;;  %733 = vmatprep.mubr.f32.mxu0 %v2326_v7 }
  0x65   : > { %2069 = vmatpush1.msk.msra.mxu1 %vm339_vm1, %v2062_v15  ;;  %804 = vmatprep.mubr.f32.mxu1 %v2326_v7 }
  0x66   : > { %2067 = vmatmul.mubr.msk.f32.vlgmr.msra.gmra.mrb[4].mxu0 %vm335_vm2, %v310_v10  ;;  %2070 = vmatmul.mubr.msk.f32.vlgmr.msra.gmra.mrb[4].mxu1 %vm335_vm2, %v310_v10 }
  0x67   : > { %2071 = vmatprep.subr.msk.mxu0 %vm339_vm1, %v651_v20  ;;  %2074 = vmatprep.subr.msk.mxu1 %vm339_vm1, %v652_v21 }
  0x68   : > { %2072 = vmatpush1.msk.msra.mxu0 %vm339_vm1, %v2063_v18  ;;  %875 = vmatprep.mubr.f32.mxu0 %v2326_v7 }
  0x69   : > { %2075 = vmatpush1.msk.msra.mxu1 %vm339_vm1, %v2064_v19  ;;  %946 = vmatprep.mubr.f32.mxu1 %v2326_v7 }
  0x6a   : > { %2073 = vmatmul.mubr.msk.f32.vlgmr.msra.gmra.mrb[6].mxu0 %vm335_vm2, %v310_v10  ;;  %2076 = vmatmul.mubr.msk.f32.vlgmr.msra.gmra.mrb[6].mxu1 %vm335_vm2, %v310_v10 }
  0x6b   : > { %2077 = vmatprep.subr.msk.mxu0 %vm339_vm1, %v970_v24  ;;  %2080 = vmatprep.subr.msk.mxu1 %vm339_vm1, %v971_v25 }
  0x6c   : > { %2078 = vmatpush1.msk.msra.mxu0 %vm339_vm1, %v953_v22  ;;  %1057 = vmatprep.mubr.f32.mxu0 %v2326_v7 }
  0x6d   : > { %2081 = vmatpush1.msk.msra.mxu1 %vm339_vm1, %v954_v23  ;;  %1128 = vmatprep.mubr.f32.mxu1 %v2326_v7 }
  0x6e   : > { %2079 = vmatmul.mubr.msk.f32.vlgmr.msra.gmra.mrb[8].mxu0 %vm335_vm2, %v312_v28  ;;  %2082 = vmatmul.mubr.msk.f32.vlgmr.msra.gmra.mrb[8].mxu1 %vm335_vm2, %v312_v28 }
  0x6f   : > { %2083 = vmatprep.subr.msk.mxu0 %vm339_vm1, %v972_v29  ;;  %2086 = vmatprep.subr.msk.mxu1 %vm339_vm1, %v973_v30 }
  0x70   : > { %2084 = vmatpush1.msk.msra.mxu0 %vm339_vm1, %v955_v26  ;;  %1199 = vmatprep.mubr.f32.mxu0 %v2326_v7 }
  0x71   : > { %2087 = vmatpush1.msk.msra.mxu1 %vm339_vm1, %v956_v27  ;;  %1270 = vmatprep.mubr.f32.mxu1 %v2326_v7 }
  0x72   : > { %2085 = vmatmul.mubr.msk.f32.vlgmr.msra.gmra.mrb[10].mxu0 %vm335_vm2, %v312_v28  ;;  %2088 = vmatmul.mubr.msk.f32.vlgmr.msra.gmra.mrb[10].mxu1 %vm335_vm2, %v312_v28 }
  0x73   : > { %2093 = vmatprep.subr.msk.mxu0 %vm339_vm1, %v1286_v33  ;;  %2096 = vmatprep.subr.msk.mxu1 %vm339_vm1, %v1287_v34 }
  0x74   : > { %2094 = vmatpush1.msk.msra.mxu0 %vm339_vm1, %v2089_v31  ;;  %1370 = vmatprep.mubr.f32.mxu0 %v2326_v7 }
  0x75   : > { %2097 = vmatpush1.msk.msra.mxu1 %vm339_vm1, %v2090_v32  ;;  %1441 = vmatprep.mubr.f32.mxu1 %v2326_v7 }
  0x76   : > { %2095 = vmatmul.mubr.msk.f32.vlgmr.msra.gmra.mrb[12].mxu0 %vm335_vm2, %v312_v28  ;;  %2098 = vmatmul.mubr.msk.f32.vlgmr.msra.gmra.mrb[12].mxu1 %vm335_vm2, %v312_v28 }
  0x77   : > { %2099 = vmatprep.subr.msk.mxu0 %vm339_vm1, %v1288_v37  ;;  %2102 = vmatprep.subr.msk.mxu1 %vm339_vm1, %v1289_v38 }
  0x78   : > { %2100 = vmatpush1.msk.msra.mxu0 %vm339_vm1, %v2091_v35  ;;  %1512 = vmatprep.mubr.f32.mxu0 %v2326_v7 }
  0x79   : > { %2103 = vmatpush1.msk.msra.mxu1 %vm339_vm1, %v2092_v36  ;;  %1583 = vmatprep.mubr.f32.mxu1 %v2326_v7 }
  0x7a   : > { %2101 = vmatmul.mubr.msk.f32.vlgmr.msra.gmra.mrb[14].mxu0 %vm335_vm2, %v312_v28  ;;  %2104 = vmatmul.mubr.msk.f32.vlgmr.msra.gmra.mrb[14].mxu1 %vm335_vm2, %v312_v28 }
  0x7b   : > { %320 = vperm.xlu0 %2169, %v311_v39  }
  0x7f   : > { %959 = vperm.xlu0 %2169, %v313_v40  }
  0xfa   : > { %v321_v48 = vpop.permute.xlu0 %320 }
  0xfb   : > { %v326_v53 = vrot.slane %v321_v48, %v325_v47 }
  0xfe   : > { %v960_v34 = vpop.permute.xlu0 %959 }
  0xff   : > { %v965_v39 = vrot.slane %v960_v34, %v325_v47 }
 0x131   : > { %v422_v43 = vpop.f32.mrb[0].mxu0  ;;  %v493_v44 = vpop.f32.mrb[0].mxu1 }
 0x132   : > { %v424_v45 = vpop.f32.mrb[1].mxu0  ;;  %v495_v46 = vpop.f32.mrb[1].mxu1  ;;  %v423_v62 = vadd.f32 %v422_v43, %v326_v53  ;;  %v494_v63 = vadd.f32 %v493_v44, %v326_v53 }
 0x133   : > { %v425_v2 = vadd.f32 %v424_v45, %v326_v53  ;;  %v496_v3 = vadd.f32 %v495_v46, %v326_v53 }
 0x135   : > { %v564_v49 = vpop.f32.mrb[2].mxu0  ;;  %v635_v50 = vpop.f32.mrb[2].mxu1 }
 0x136   : > { %v566_v51 = vpop.f32.mrb[3].mxu0  ;;  %v637_v52 = vpop.f32.mrb[3].mxu1  ;;  %v565_v18 = vadd.f32 %v564_v49, %v326_v53  ;;  %v636_v19 = vadd.f32 %v635_v50, %v326_v53 }
 0x137   : > { %v567_v22 = vadd.f32 %v566_v51, %v326_v53  ;;  %v638_v23 = vadd.f32 %v637_v52, %v326_v53 }
 0x139   : > { %v735_v54 = vpop.f32.mrb[4].mxu0  ;;  %v806_v55 = vpop.f32.mrb[4].mxu1 }
 0x13a   : > { %v736_v56 = vadd.f32 %v735_v54, %v326_v53  ;;  %v807_v57 = vadd.f32 %v806_v55, %v326_v53  ;;  %v737_v58 = vpop.f32.mrb[5].mxu0  ;;  %v808_v59 = vpop.f32.mrb[5].mxu1 }
 0x13b   : > { %v738_v60 = vadd.f32 %v737_v58, %v326_v53  ;;  %v809_v61 = vadd.f32 %v808_v59, %v326_v53 }
 0x13c   : > { %v1598_v0 = vrot.slane %v736_v56, 7  ;;  %v1600_v1 = vrot.slane %v807_v57, 7 }
 0x13d   : > { %v1599_v4 = vrot.slane %v738_v60, 7  ;;  %v1601_v5 = vrot.slane %v809_v61, 7  ;;  %v877_v6 = vpop.f32.mrb[6].mxu0  ;;  %v948_v7 = vpop.f32.mrb[6].mxu1 }
 0x13e   : > { %v878_v8 = vadd.f32 %v877_v6, %v326_v53  ;;  %v949_v9 = vadd.f32 %v948_v7, %v326_v53  ;;  %v879_v10 = vpop.f32.mrb[7].mxu0  ;;  %v950_v11 = vpop.f32.mrb[7].mxu1  ;;  %v1615_v12 = vsel %vm1614_vm3, %v423_v62, %v1598_v0  ;;  %v1617_v13 = vsel %vm1614_vm3, %v494_v63, %v1600_v1 }
 0x13f   : > { %v880_v14 = vadd.f32 %v879_v10, %v326_v53  ;;  %v951_v15 = vadd.f32 %v950_v11, %v326_v53  ;;  %v1616_v16 = vsel %vm1614_vm3, %v425_v2, %v1599_v4  ;;  %v1618_v17 = vsel %vm1614_vm3, %v496_v3, %v1601_v5 }
 0x140   : > { %v1602_v20 = vrot.slane %v878_v8, 7  ;;  %v1604_v21 = vrot.slane %v949_v9, 7  ;;  %1656 = vmatprep.subr.mxu0 %v1616_v16  ;;  %1726 = vmatprep.subr.mxu1 %v1618_v17 }
 0x141   : > { %v1603_v24 = vrot.slane %v880_v14, 7  ;;  %v1605_v25 = vrot.slane %v951_v15, 7  ;;  %v1059_v26 = vpop.f32.mrb[8].mxu0  ;;  %1657 = vmatpush1.xpose.msra.mxu0 %v1615_v12  ;;  %1727 = vmatpush1.xpose.msra.mxu1 %v1617_v13  ;;  %v1130_v27 = vpop.f32.mrb[8].mxu1 }
 0x142   : > { %v1061_v28 = vpop.f32.mrb[9].mxu0  ;;  %v1132_v29 = vpop.f32.mrb[9].mxu1  ;;  %v1619_v30 = vsel %vm1614_vm3, %v565_v18, %v1602_v20  ;;  %v1621_v31 = vsel %vm1614_vm3, %v636_v19, %v1604_v21  ;;  %v1060_v50 = vadd.f32 %v1059_v26, %v965_v39  ;;  %v1131_v51 = vadd.f32 %v1130_v27, %v965_v39  ;;  %v1655_v26 = vld [vmem:[#allocation9] sm:$0x3] }
 0x143   : > { %v1620_v32 = vsel %vm1614_vm3, %v567_v22, %v1603_v24  ;;  %v1622_v33 = vsel %vm1614_vm3, %v638_v23, %v1605_v25  ;;  %v1062_v54 = vadd.f32 %v1061_v28, %v965_v39  ;;  %v1133_v55 = vadd.f32 %v1132_v29, %v965_v39 }
 0x144   : > { %1796 = vmatprep.subr.mxu0 %v1620_v32  ;;  %1866 = vmatprep.subr.mxu1 %v1622_v33 }
 0x145   : > { %v1201_v35 = vpop.f32.mrb[10].mxu0  ;;  %v1272_v36 = vpop.f32.mrb[10].mxu1 }
 0x146   : > { %v1203_v37 = vpop.f32.mrb[11].mxu0  ;;  %v1274_v38 = vpop.f32.mrb[11].mxu1  ;;  %v1202_v4 = vadd.f32 %v1201_v35, %v965_v39  ;;  %v1273_v5 = vadd.f32 %v1272_v36, %v965_v39 }
 0x147   : > { %v1204_v8 = vadd.f32 %v1203_v37, %v965_v39  ;;  %v1275_v9 = vadd.f32 %v1274_v38, %v965_v39 }
 0x149   : > { %v1372_v40 = vpop.f32.mrb[12].mxu0  ;;  %v1443_v41 = vpop.f32.mrb[12].mxu1 }
 0x14a   : > { %v1373_v43 = vadd.f32 %v1372_v40, %v965_v39  ;;  %v1444_v44 = vadd.f32 %v1443_v41, %v965_v39  ;;  %v1374_v45 = vpop.f32.mrb[13].mxu0  ;;  %v1445_v46 = vpop.f32.mrb[13].mxu1 }
 0x14b   : > { %v1375_v48 = vadd.f32 %v1374_v45, %v965_v39  ;;  %v1446_v49 = vadd.f32 %v1445_v46, %v965_v39 }
 0x14c   : > { %v1631_v52 = vrot.slane %v1373_v43, 7  ;;  %v1633_v53 = vrot.slane %v1444_v44, 7 }
 0x14d   : > { %v1632_v56 = vrot.slane %v1375_v48, 7  ;;  %v1634_v57 = vrot.slane %v1446_v49, 7  ;;  %v1514_v58 = vpop.f32.mrb[14].mxu0  ;;  %v1585_v59 = vpop.f32.mrb[14].mxu1 }
 0x14e   : > { %v1515_v42 = vadd.f32 %v1514_v58, %v965_v39  ;;  %v1586_v47 = vadd.f32 %v1585_v59, %v965_v39  ;;  %v1516_v60 = vpop.f32.mrb[15].mxu0  ;;  %v1587_v61 = vpop.f32.mrb[15].mxu1  ;;  %v1647_v62 = vsel %vm1614_vm3, %v1060_v50, %v1631_v52  ;;  %v1649_v63 = vsel %vm1614_vm3, %v1131_v51, %v1633_v53 }
 0x14f   : > { %v1517_v0 = vadd.f32 %v1516_v60, %v965_v39  ;;  %v1588_v1 = vadd.f32 %v1587_v61, %v965_v39  ;;  %v1648_v2 = vsel %vm1614_vm3, %v1062_v54, %v1632_v56  ;;  %v1650_v3 = vsel %vm1614_vm3, %v1133_v55, %v1634_v57 }
 0x150   : > { %v1635_v6 = vrot.slane %v1515_v42, 7  ;;  %v1637_v7 = vrot.slane %v1586_v47, 7  ;;  %1720 = vmatprep.mubr.f32.mxu0 %v1648_v2  ;;  %1790 = vmatprep.mubr.f32.mxu1 %v1650_v3 }
 0x151   : > { %v1636_v10 = vrot.slane %v1517_v0, 7  ;;  %v1638_v11 = vrot.slane %v1588_v1, 7  ;;  %1721 = vmatmul.mubr.f32.vlgmr.msra.gmra.mrb[16].mxu0 %v1647_v62  ;;  %1791 = vmatmul.mubr.f32.vlgmr.msra.gmra.mrb[16].mxu1 %v1649_v63 }
 0x152   : > { %1797 = vmatpush1.xpose.msra.mxu0 %v1619_v30  ;;  %1867 = vmatpush1.xpose.msra.mxu1 %v1621_v31  ;;  %v1651_v12 = vsel %vm1614_vm3, %v1202_v4, %v1635_v6  ;;  %v1653_v13 = vsel %vm1614_vm3, %v1273_v5, %v1637_v7 }
 0x153   : > { %v1652_v14 = vsel %vm1614_vm3, %v1204_v8, %v1636_v10  ;;  %v1654_v15 = vsel %vm1614_vm3, %v1275_v9, %v1638_v11 }
 0x154   : > { %1860 = vmatprep.mubr.f32.mxu0 %v1652_v14  ;;  %1930 = vmatprep.mubr.f32.mxu1 %v1654_v15 }
 0x155   : > { %1861 = vmatmul.mubr.f32.vlgmr.msra.gmra.mrb[18].mxu0 %v1651_v12  ;;  %1931 = vmatmul.mubr.f32.vlgmr.msra.gmra.mrb[18].mxu1 %v1653_v13 }
 0x224   : > { %v1722_v16 = vpop.f32.mrb[16].mxu0  ;;  %v1792_v17 = vpop.f32.mrb[16].mxu1 }
 0x225   : > { %v1793_v18 = vadd.f32 %v1792_v17, %v1722_v16  ;;  %v1724_v19 = vpop.f32.mrb[17].mxu0  ;;  %v1794_v20 = vpop.f32.mrb[17].mxu1 }
 0x228   : > { %v1862_v21 = vpop.f32.mrb[18].mxu0  ;;  %v1932_v22 = vpop.f32.mrb[18].mxu1 }
 0x229   : > { %v1863_v23 = vadd.f32 %v1862_v21, %v1793_v18  ;;  %v1864_v24 = vpop.f32.mrb[19].mxu0  ;;  %v1934_v25 = vpop.f32.mrb[19].mxu1  ;;  %1942 = sbr.rel (%p2105_p10) target bundleno = 882 (0x372), region = 60 }
 0x22b   : > { %v1933_v27 = vadd.f32 %v1932_v22, %v1863_v23 }
 0x22d   : > { %v1936_v28 = vadd.f32 %v1933_v27, %v1655_v26 }
 0x22f   : > { %1938 = vst.msk [vmem:[#allocation9] sm:$0x3] %vm1937_vm4, %v1936_v28 }
 0x236   : > { %v1943_v29 = vld [vmem:[#allocation9] sm:$0x3] }
 0x237   : > { %v1944_v30 = vsel %vm1937_vm4, %v1943_v29, -inf }
 0x238   : > { %1945 = vmax.xlane.f32.xlu0 %v1944_v30 }
 0x2c5   : > { %v1946_v31 = vpop.xlane.xlu0 %1945 }
 0x2c6   : > { %v1947_v32 = vsub.f32 %v1943_v29, %v1946_v31 }
 0x2c8   : > { %v1948_v33 = vmul.f32 1.442695, %v1947_v32 }
 0x2ca   : > { %2186 = vpow2.f32 %v1948_v33 }
 0x2d4   : > { %v2187_v34 = vpop.eup %2186 }
 0x2d5   : > { %v1950_v35 = vsel %vm1937_vm4, %v2187_v34, 0.0 }
 0x2d6   : > { %1951 = vadd.xlane.f32.xlu0 %v1950_v35 }
 0x363   : > { %v1952_v36 = vpop.xlane.xlu0 %1951 }
 0x364   : > { %2188 = vrcp.f32 %v1952_v36 }
 0x36e   : > { %v2189_v37 = vpop.eup %2188 }
 0x36f   : > { %v1954_v38 = vmul.f32 %v2189_v37, %v2187_v34 }
 0x371   : > { %1955 = vst.msk [vmem:[#allocation9] sm:$0x3] %vm1937_vm4, %v1954_v38 }
 0x372 PF: > { %p2128_p3 = scmp.eq.s32.totalorder %s2389_s3, 1  ;;  %s2328_s20 = smov [#allocation9]  }
 0x373   : > { %s1963_s23 = sshll.u32 %s2328_s20, 4  ;;  %s1964_s23 = int_to_ptr.vmem [resolvable:$true] %s1963_s23 }
 0x374   : > { %s2250_s25 = scalar_lea.vmem %s1964_s23, 32  ;;  %p2257_p12 = scmp.lt.s32.totalorder %s1964_s23, %s1964_s23 }
 0x375   : > { %p2251_p6 = scmp.ne.s32.totalorder %s1964_s23, %s2250_s25  ;;  %p2258_p2 = scmp.lt.s32.totalorder %s2250_s25, %s2250_s25 }
 0x377   : > { %p2252_p0 = pnand %p2251_p6, %p2128_p3  ;;  %p2259_p4 = por %p2258_p2, %p2257_p12 }
 0x379   : > { %p2253_p1 = pneg %p2252_p0 }
 0x37b   : > { %p2260_p5 = pnand %p2259_p4, %p2253_p1 }
 0x37d   : > { %2263 = shalt.err (!%p2260_p5)
}
 0x37e   : > { %s2264_s29 = scalar_lea.hbm %s2678_s6, 32 }
 0x37f   : > { %p2265_p9 = scmp.ne.s32.totalorder %s2678_s6, %s2264_s29  ;;  %p2270_p7 = scmp.lt.u32.totalorder %s2264_s29, %s2678_s6 }
 0x381   : > { %p2266_p11 = pnand %p2265_p9, %p2128_p3 }
 0x383   : > { %p2267_p13 = pneg %p2266_p11 }
 0x385   : > { %p2272_p8 = pnand %p2270_p7, %p2267_p13 }
 0x387   : > { %2275 = shalt.err (!%p2272_p8)
}
 0x388   : > { %2117 = dma.vmem_to_hbm [thread:$0]  (%p2128_p3), %s1964_s23, 32, %s2678_s6, [#allocation6]  }
 0x389   : > { %2301 = dma.done.wait (%p2128_p3), [#allocation6], 32  }
 0x38a   : > { %2303 = vsyncadd (%p2128_p3), [#allocation6], 4294967264 }
 0x38b PF: > { %p24_p10 = scmp.ge.s32.totalorder %s2392_s5, 4   ;;  %s2685_s25 = smov %s2310_s26 }
 0x38c   : > { %s2686_s26 = smov %s2314_s27  ;;  %s2687_s27 = smov %s2402_s7 }
 0x38d   : > { %s2688_s28 = smov %s2392_s5  ;;  %26 = sbr.rel (!%p24_p10) target bundleno = 9 (0x9), region = 104 }
 0x394   :  { %1976 = vsyncpa [#allocation5], 1 }
 0x395   :  { %1978 = vsyncpa [#allocation5 + $0x1], 1 }
 0x396   :  { %1979 = vsyncpa [#allocation8], 1 }
 0x397   :  { %1981 = vsyncpa [#allocation8 + $0x1], 1 }
 0x398   :  { %1982 = vsyncpa [#allocation6], 1 }
 0x399   :  { %1984 = vsyncpa [#allocation6 + $0x1], 1 }

</bundles_post_ra>
